<compile_context>
chip_gen: v5e
topology: v5e:2x2
jax: 0.10.0
libtpu: 0.0.40
codegen_flags: <defaults>
</compile_context>

<pallas_src>
import jax
import jax.numpy as jnp
from jax import lax
from jax.experimental import pallas as pl
from jax.experimental.pallas import tpu as pltpu


def bow_kernel(ids_ref, table_ref, w_ref, b_ref, out_ref, acc_ref):
    # ids_ref:   (B_pad, S) int32 in SMEM (scalar-prefetched token ids)
    # table_ref: (V, E)     f32  in VMEM (full embedding table)
    # w_ref:     (E, T_pad) f32  (Linear weight, pre-transposed + lane-padded)
    # b_ref:     (1, T_pad) f32  (bias, lane-padded)
    # out_ref:   (B_pad, T_pad) f32
    # acc_ref:   (B_pad, E) f32 VMEM scratch (bag-of-words accumulator)
    B_pad, S = ids_ref.shape
    E = table_ref.shape[1]

    # Fused embedding gather + sum over the sequence axis:
    # accumulate table rows directly (VPU adds), one batch row at a time.
    for b in range(B_pad):
        def body(s, acc, b=b):
            row = table_ref[pl.ds(ids_ref[b, s], 1), :]        # (1, E) dynamic row
            return acc + row
        acc_ref[pl.ds(b, 1), :] = lax.fori_loop(
            0, S, body, jnp.zeros((1, E), jnp.float32), unroll=True)

    # sigmoid: exp + reciprocal both land on the EUP slot (divide off the VALU).
    bow = pl.reciprocal(1.0 + jnp.exp(-acc_ref[...]))           # (B_pad, E)

    # Linear: (B_pad, E) x (E, T_pad) on the MXU, broadcast bias add.
    out_ref[...] = jnp.dot(bow, w_ref[...],
                           preferred_element_type=jnp.float32) + b_ref[...]


def _round_up(x, m):
    return ((x + m - 1) // m) * m


def bow_classifier_forward(sentence, embed_table, w_t, bias):
    """sentence: (B, S) int32 token ids; embed_table: (V, E) f32;
    w_t: (E, T) transposed Linear weight; bias: (T,)."""
    B, S = sentence.shape
    V, E = embed_table.shape
    T = w_t.shape[1]

    B_pad = _round_up(B, 8)      # sublane-friendly batch
    T_pad = _round_up(T, 128)    # lane-dense output

    ids = jnp.zeros((B_pad, S), jnp.int32).at[:B, :].set(sentence)
    w_pad = jnp.zeros((E, T_pad), jnp.float32).at[:, :T].set(w_t.astype(jnp.float32))
    b_pad = jnp.zeros((1, T_pad), jnp.float32).at[:, :T].set(
        bias.astype(jnp.float32).reshape(1, T))

    out_pad = pl.pallas_call(
        bow_kernel,
        out_shape=jax.ShapeDtypeStruct((B_pad, T_pad), jnp.float32),
        grid_spec=pltpu.PrefetchScalarGridSpec(
            num_scalar_prefetch=1,          # `ids` -> SMEM, passed first to kernel
            grid=(1,),
            in_specs=[
                pl.BlockSpec((V, E), lambda i, ids: (0, 0)),        # full table in VMEM
                pl.BlockSpec((E, T_pad), lambda i, ids: (0, 0)),
                pl.BlockSpec((1, T_pad), lambda i, ids: (0, 0)),
            ],
            out_specs=pl.BlockSpec((B_pad, T_pad), lambda i, ids: (0, 0)),
            scratch_shapes=[pltpu.VMEM((B_pad, E), jnp.float32)],
        ),
        compiler_params=pltpu.CompilerParams(
            dimension_semantics=("arbitrary",)),
    )(ids, embed_table, w_pad, b_pad)

    return out_pad[:B, :T]


if __name__ == "__main__":
    # Small shapes consistent with the module's forward:
    #   vocab=50, embedding_dim=32, tagset_size=5, batch=2, seq=8
    VOCAB = 50
    EMB = 32
    TAGS = 5
    B, S = 2, 8

    key = jax.random.PRNGKey(0)
    k_emb, k_w, k_b, k_tok = jax.random.split(key, 4)

    # Deterministic parameter init (synthetic, not a checkpoint load).
    embed_table = jax.random.normal(k_emb, (VOCAB, EMB), dtype=jnp.float32)
    # nn.Linear(E, T): weight (T, E); pass transposed (E, T) to the kernel.
    w = jax.random.normal(k_w, (TAGS, EMB), dtype=jnp.float32) * 0.1
    b = jax.random.normal(k_b, (TAGS,), dtype=jnp.float32) * 0.1
    w_t = w.T

    sentence = jax.random.randint(k_tok, (B, S), 0, VOCAB, dtype=jnp.int32)

    out = bow_classifier_forward(sentence, embed_table, w_t, b)
    out = jax.block_until_ready(out)

    # Reference check in plain JAX.
    embeds_ref = jnp.take(embed_table, sentence, axis=0)
    bow_ref = jax.nn.sigmoid(embeds_ref.sum(axis=1))
    ref = bow_ref @ w.T + b
    assert out.shape == (B, TAGS)
    assert jnp.allclose(out, ref, atol=1e-5, rtol=1e-5)

    print("KERNEL_OK")
</pallas_src>

<mosaic_0001>
module attributes {stable_mosaic.version = 11 : i64} {
  func.func @bow_kernel(%arg0: i32, %arg1: memref<8x8xi32, #tpu.memory_space<smem>>, %arg2: memref<50x32xf32, #tpu.memory_space<vmem>>, %arg3: memref<32x128xf32, #tpu.memory_space<vmem>>, %arg4: memref<1x128xf32, #tpu.memory_space<vmem>>, %arg5: memref<8x128xf32, #tpu.memory_space<vmem>>, %arg6: memref<8x32xf32, #tpu.memory_space<vmem>>) attributes {dimension_semantics = [#tpu.dimension_semantics<arbitrary>], iteration_bounds = array<i64: 1>, scalar_prefetch = 1 : i64, scratch_operands = 1 : i64, tpu.core_type = #tpu.core_type<tc>, window_params = [{pipeline_mode = #tpu.pipeline_mode<synchronous>, transform_indices = @transform_0, window_bounds = array<i64: 50, 32>}, {pipeline_mode = #tpu.pipeline_mode<synchronous>, transform_indices = @transform_1, window_bounds = array<i64: 32, 128>}, {pipeline_mode = #tpu.pipeline_mode<synchronous>, transform_indices = @transform_2, window_bounds = array<i64: 1, 128>}, {pipeline_mode = #tpu.pipeline_mode<synchronous>, transform_indices = @transform_3, window_bounds = array<i64: 8, 128>}]} {
    %cst = arith.constant 0.000000e+00 : f32
    %0 = vector.broadcast %cst : f32 to vector<1x32xf32>
    %c0_i32 = arith.constant 0 : i32
    %c0 = arith.constant 0 : index
    %1 = arith.index_cast %c0_i32 : i32 to index
    %2 = memref.load %arg1[%c0, %1] : memref<8x8xi32, #tpu.memory_space<smem>>
    %3 = arith.index_cast %2 : i32 to index
    %c0_0 = arith.constant 0 : index
    %4 = vector.load %arg2[%3, %c0_0] : memref<50x32xf32, #tpu.memory_space<vmem>>, vector<1x32xf32>
    %5 = arith.addf %0, %4 : vector<1x32xf32>
    %c1_i32 = arith.constant 1 : i32
    %c0_1 = arith.constant 0 : index
    %6 = arith.index_cast %c1_i32 : i32 to index
    %7 = memref.load %arg1[%c0_1, %6] : memref<8x8xi32, #tpu.memory_space<smem>>
    %8 = arith.index_cast %7 : i32 to index
    %c0_2 = arith.constant 0 : index
    %9 = vector.load %arg2[%8, %c0_2] : memref<50x32xf32, #tpu.memory_space<vmem>>, vector<1x32xf32>
    %10 = arith.addf %5, %9 : vector<1x32xf32>
    %c2_i32 = arith.constant 2 : i32
    %c0_3 = arith.constant 0 : index
    %11 = arith.index_cast %c2_i32 : i32 to index
    %12 = memref.load %arg1[%c0_3, %11] : memref<8x8xi32, #tpu.memory_space<smem>>
    %13 = arith.index_cast %12 : i32 to index
    %c0_4 = arith.constant 0 : index
    %14 = vector.load %arg2[%13, %c0_4] : memref<50x32xf32, #tpu.memory_space<vmem>>, vector<1x32xf32>
    %15 = arith.addf %10, %14 : vector<1x32xf32>
    %c3_i32 = arith.constant 3 : i32
    %c0_5 = arith.constant 0 : index
    %16 = arith.index_cast %c3_i32 : i32 to index
    %17 = memref.load %arg1[%c0_5, %16] : memref<8x8xi32, #tpu.memory_space<smem>>
    %18 = arith.index_cast %17 : i32 to index
    %c0_6 = arith.constant 0 : index
    %19 = vector.load %arg2[%18, %c0_6] : memref<50x32xf32, #tpu.memory_space<vmem>>, vector<1x32xf32>
    %20 = arith.addf %15, %19 : vector<1x32xf32>
    %c4_i32 = arith.constant 4 : i32
    %c0_7 = arith.constant 0 : index
    %21 = arith.index_cast %c4_i32 : i32 to index
    %22 = memref.load %arg1[%c0_7, %21] : memref<8x8xi32, #tpu.memory_space<smem>>
    %23 = arith.index_cast %22 : i32 to index
    %c0_8 = arith.constant 0 : index
    %24 = vector.load %arg2[%23, %c0_8] : memref<50x32xf32, #tpu.memory_space<vmem>>, vector<1x32xf32>
    %25 = arith.addf %20, %24 : vector<1x32xf32>
    %c5_i32 = arith.constant 5 : i32
    %c0_9 = arith.constant 0 : index
    %26 = arith.index_cast %c5_i32 : i32 to index
    %27 = memref.load %arg1[%c0_9, %26] : memref<8x8xi32, #tpu.memory_space<smem>>
    %28 = arith.index_cast %27 : i32 to index
    %c0_10 = arith.constant 0 : index
    %29 = vector.load %arg2[%28, %c0_10] : memref<50x32xf32, #tpu.memory_space<vmem>>, vector<1x32xf32>
    %30 = arith.addf %25, %29 : vector<1x32xf32>
    %c6_i32 = arith.constant 6 : i32
    %c0_11 = arith.constant 0 : index
    %31 = arith.index_cast %c6_i32 : i32 to index
    %32 = memref.load %arg1[%c0_11, %31] : memref<8x8xi32, #tpu.memory_space<smem>>
    %33 = arith.index_cast %32 : i32 to index
    %c0_12 = arith.constant 0 : index
    %34 = vector.load %arg2[%33, %c0_12] : memref<50x32xf32, #tpu.memory_space<vmem>>, vector<1x32xf32>
    %35 = arith.addf %30, %34 : vector<1x32xf32>
    %c7_i32 = arith.constant 7 : i32
    %c0_13 = arith.constant 0 : index
    %36 = arith.index_cast %c7_i32 : i32 to index
    %37 = memref.load %arg1[%c0_13, %36] : memref<8x8xi32, #tpu.memory_space<smem>>
    %38 = arith.index_cast %37 : i32 to index
    %c0_14 = arith.constant 0 : index
    %39 = vector.load %arg2[%38, %c0_14] : memref<50x32xf32, #tpu.memory_space<vmem>>, vector<1x32xf32>
    %40 = arith.addf %35, %39 : vector<1x32xf32>
    %c8_i32 = arith.constant 8 : i32
    %c0_15 = arith.constant 0 : index
    %c0_16 = arith.constant 0 : index
    %41 = vector.load %arg6[%c0_15, %c0_16] : memref<8x32xf32, #tpu.memory_space<vmem>>, vector<1x32xf32>
    tpu.vector_store %arg6[%c0_15, %c0_16], %40 {strides = array<i32>} : memref<8x32xf32, #tpu.memory_space<vmem>>, vector<1x32xf32>,
    %cst_17 = arith.constant 0.000000e+00 : f32
    %42 = vector.broadcast %cst_17 : f32 to vector<1x32xf32>
    %c0_i32_18 = arith.constant 0 : i32
    %c1 = arith.constant 1 : index
    %43 = arith.index_cast %c0_i32_18 : i32 to index
    %44 = memref.load %arg1[%c1, %43] : memref<8x8xi32, #tpu.memory_space<smem>>
    %45 = arith.index_cast %44 : i32 to index
    %c0_19 = arith.constant 0 : index
    %46 = vector.load %arg2[%45, %c0_19] : memref<50x32xf32, #tpu.memory_space<vmem>>, vector<1x32xf32>
    %47 = arith.addf %42, %46 : vector<1x32xf32>
    %c1_i32_20 = arith.constant 1 : i32
    %c1_21 = arith.constant 1 : index
    %48 = arith.index_cast %c1_i32_20 : i32 to index
    %49 = memref.load %arg1[%c1_21, %48] : memref<8x8xi32, #tpu.memory_space<smem>>
    %50 = arith.index_cast %49 : i32 to index
    %c0_22 = arith.constant 0 : index
    %51 = vector.load %arg2[%50, %c0_22] : memref<50x32xf32, #tpu.memory_space<vmem>>, vector<1x32xf32>
    %52 = arith.addf %47, %51 : vector<1x32xf32>
    %c2_i32_23 = arith.constant 2 : i32
    %c1_24 = arith.constant 1 : index
    %53 = arith.index_cast %c2_i32_23 : i32 to index
    %54 = memref.load %arg1[%c1_24, %53] : memref<8x8xi32, #tpu.memory_space<smem>>
    %55 = arith.index_cast %54 : i32 to index
    %c0_25 = arith.constant 0 : index
    %56 = vector.load %arg2[%55, %c0_25] : memref<50x32xf32, #tpu.memory_space<vmem>>, vector<1x32xf32>
    %57 = arith.addf %52, %56 : vector<1x32xf32>
    %c3_i32_26 = arith.constant 3 : i32
    %c1_27 = arith.constant 1 : index
    %58 = arith.index_cast %c3_i32_26 : i32 to index
    %59 = memref.load %arg1[%c1_27, %58] : memref<8x8xi32, #tpu.memory_space<smem>>
    %60 = arith.index_cast %59 : i32 to index
    %c0_28 = arith.constant 0 : index
    %61 = vector.load %arg2[%60, %c0_28] : memref<50x32xf32, #tpu.memory_space<vmem>>, vector<1x32xf32>
    %62 = arith.addf %57, %61 : vector<1x32xf32>
    %c4_i32_29 = arith.constant 4 : i32
    %c1_30 = arith.constant 1 : index
    %63 = arith.index_cast %c4_i32_29 : i32 to index
    %64 = memref.load %arg1[%c1_30, %63] : memref<8x8xi32, #tpu.memory_space<smem>>
    %65 = arith.index_cast %64 : i32 to index
    %c0_31 = arith.constant 0 : index
    %66 = vector.load %arg2[%65, %c0_31] : memref<50x32xf32, #tpu.memory_space<vmem>>, vector<1x32xf32>
    %67 = arith.addf %62, %66 : vector<1x32xf32>
    %c5_i32_32 = arith.constant 5 : i32
    %c1_33 = arith.constant 1 : index
    %68 = arith.index_cast %c5_i32_32 : i32 to index
    %69 = memref.load %arg1[%c1_33, %68] : memref<8x8xi32, #tpu.memory_space<smem>>
    %70 = arith.index_cast %69 : i32 to index
    %c0_34 = arith.constant 0 : index
    %71 = vector.load %arg2[%70, %c0_34] : memref<50x32xf32, #tpu.memory_space<vmem>>, vector<1x32xf32>
    %72 = arith.addf %67, %71 : vector<1x32xf32>
    %c6_i32_35 = arith.constant 6 : i32
    %c1_36 = arith.constant 1 : index
    %73 = arith.index_cast %c6_i32_35 : i32 to index
    %74 = memref.load %arg1[%c1_36, %73] : memref<8x8xi32, #tpu.memory_space<smem>>
    %75 = arith.index_cast %74 : i32 to index
    %c0_37 = arith.constant 0 : index
    %76 = vector.load %arg2[%75, %c0_37] : memref<50x32xf32, #tpu.memory_space<vmem>>, vector<1x32xf32>
    %77 = arith.addf %72, %76 : vector<1x32xf32>
    %c7_i32_38 = arith.constant 7 : i32
    %c1_39 = arith.constant 1 : index
    %78 = arith.index_cast %c7_i32_38 : i32 to index
    %79 = memref.load %arg1[%c1_39, %78] : memref<8x8xi32, #tpu.memory_space<smem>>
    %80 = arith.index_cast %79 : i32 to index
    %c0_40 = arith.constant 0 : index
    %81 = vector.load %arg2[%80, %c0_40] : memref<50x32xf32, #tpu.memory_space<vmem>>, vector<1x32xf32>
    %82 = arith.addf %77, %81 : vector<1x32xf32>
    %c8_i32_41 = arith.constant 8 : i32
    %c1_42 = arith.constant 1 : index
    %c0_43 = arith.constant 0 : index
    %83 = vector.load %arg6[%c1_42, %c0_43] : memref<8x32xf32, #tpu.memory_space<vmem>>, vector<1x32xf32>
    tpu.vector_store %arg6[%c1_42, %c0_43], %82 {strides = array<i32>} : memref<8x32xf32, #tpu.memory_space<vmem>>, vector<1x32xf32>,
    %cst_44 = arith.constant 0.000000e+00 : f32
    %84 = vector.broadcast %cst_44 : f32 to vector<1x32xf32>
    %c0_i32_45 = arith.constant 0 : i32
    %c2 = arith.constant 2 : index
    %85 = arith.index_cast %c0_i32_45 : i32 to index
    %86 = memref.load %arg1[%c2, %85] : memref<8x8xi32, #tpu.memory_space<smem>>
    %87 = arith.index_cast %86 : i32 to index
    %c0_46 = arith.constant 0 : index
    %88 = vector.load %arg2[%87, %c0_46] : memref<50x32xf32, #tpu.memory_space<vmem>>, vector<1x32xf32>
    %89 = arith.addf %84, %88 : vector<1x32xf32>
    %c1_i32_47 = arith.constant 1 : i32
    %c2_48 = arith.constant 2 : index
    %90 = arith.index_cast %c1_i32_47 : i32 to index
    %91 = memref.load %arg1[%c2_48, %90] : memref<8x8xi32, #tpu.memory_space<smem>>
    %92 = arith.index_cast %91 : i32 to index
    %c0_49 = arith.constant 0 : index
    %93 = vector.load %arg2[%92, %c0_49] : memref<50x32xf32, #tpu.memory_space<vmem>>, vector<1x32xf32>
    %94 = arith.addf %89, %93 : vector<1x32xf32>
    %c2_i32_50 = arith.constant 2 : i32
    %c2_51 = arith.constant 2 : index
    %95 = arith.index_cast %c2_i32_50 : i32 to index
    %96 = memref.load %arg1[%c2_51, %95] : memref<8x8xi32, #tpu.memory_space<smem>>
    %97 = arith.index_cast %96 : i32 to index
    %c0_52 = arith.constant 0 : index
    %98 = vector.load %arg2[%97, %c0_52] : memref<50x32xf32, #tpu.memory_space<vmem>>, vector<1x32xf32>
    %99 = arith.addf %94, %98 : vector<1x32xf32>
    %c3_i32_53 = arith.constant 3 : i32
    %c2_54 = arith.constant 2 : index
    %100 = arith.index_cast %c3_i32_53 : i32 to index
    %101 = memref.load %arg1[%c2_54, %100] : memref<8x8xi32, #tpu.memory_space<smem>>
    %102 = arith.index_cast %101 : i32 to index
    %c0_55 = arith.constant 0 : index
    %103 = vector.load %arg2[%102, %c0_55] : memref<50x32xf32, #tpu.memory_space<vmem>>, vector<1x32xf32>
    %104 = arith.addf %99, %103 : vector<1x32xf32>
    %c4_i32_56 = arith.constant 4 : i32
    %c2_57 = arith.constant 2 : index
    %105 = arith.index_cast %c4_i32_56 : i32 to index
    %106 = memref.load %arg1[%c2_57, %105] : memref<8x8xi32, #tpu.memory_space<smem>>
    %107 = arith.index_cast %106 : i32 to index
    %c0_58 = arith.constant 0 : index
    %108 = vector.load %arg2[%107, %c0_58] : memref<50x32xf32, #tpu.memory_space<vmem>>, vector<1x32xf32>
    %109 = arith.addf %104, %108 : vector<1x32xf32>
    %c5_i32_59 = arith.constant 5 : i32
    %c2_60 = arith.constant 2 : index
    %110 = arith.index_cast %c5_i32_59 : i32 to index
    %111 = memref.load %arg1[%c2_60, %110] : memref<8x8xi32, #tpu.memory_space<smem>>
    %112 = arith.index_cast %111 : i32 to index
    %c0_61 = arith.constant 0 : index
    %113 = vector.load %arg2[%112, %c0_61] : memref<50x32xf32, #tpu.memory_space<vmem>>, vector<1x32xf32>
    %114 = arith.addf %109, %113 : vector<1x32xf32>
    %c6_i32_62 = arith.constant 6 : i32
    %c2_63 = arith.constant 2 : index
    %115 = arith.index_cast %c6_i32_62 : i32 to index
    %116 = memref.load %arg1[%c2_63, %115] : memref<8x8xi32, #tpu.memory_space<smem>>
    %117 = arith.index_cast %116 : i32 to index
    %c0_64 = arith.constant 0 : index
    %118 = vector.load %arg2[%117, %c0_64] : memref<50x32xf32, #tpu.memory_space<vmem>>, vector<1x32xf32>
    %119 = arith.addf %114, %118 : vector<1x32xf32>
    %c7_i32_65 = arith.constant 7 : i32
    %c2_66 = arith.constant 2 : index
    %120 = arith.index_cast %c7_i32_65 : i32 to index
    %121 = memref.load %arg1[%c2_66, %120] : memref<8x8xi32, #tpu.memory_space<smem>>
    %122 = arith.index_cast %121 : i32 to index
    %c0_67 = arith.constant 0 : index
    %123 = vector.load %arg2[%122, %c0_67] : memref<50x32xf32, #tpu.memory_space<vmem>>, vector<1x32xf32>
    %124 = arith.addf %119, %123 : vector<1x32xf32>
    %c8_i32_68 = arith.constant 8 : i32
    %c2_69 = arith.constant 2 : index
    %c0_70 = arith.constant 0 : index
    %125 = vector.load %arg6[%c2_69, %c0_70] : memref<8x32xf32, #tpu.memory_space<vmem>>, vector<1x32xf32>
    tpu.vector_store %arg6[%c2_69, %c0_70], %124 {strides = array<i32>} : memref<8x32xf32, #tpu.memory_space<vmem>>, vector<1x32xf32>,
    %cst_71 = arith.constant 0.000000e+00 : f32
    %126 = vector.broadcast %cst_71 : f32 to vector<1x32xf32>
    %c0_i32_72 = arith.constant 0 : i32
    %c3 = arith.constant 3 : index
    %127 = arith.index_cast %c0_i32_72 : i32 to index
    %128 = memref.load %arg1[%c3, %127] : memref<8x8xi32, #tpu.memory_space<smem>>
    %129 = arith.index_cast %128 : i32 to index
    %c0_73 = arith.constant 0 : index
    %130 = vector.load %arg2[%129, %c0_73] : memref<50x32xf32, #tpu.memory_space<vmem>>, vector<1x32xf32>
    %131 = arith.addf %126, %130 : vector<1x32xf32>
    %c1_i32_74 = arith.constant 1 : i32
    %c3_75 = arith.constant 3 : index
    %132 = arith.index_cast %c1_i32_74 : i32 to index
    %133 = memref.load %arg1[%c3_75, %132] : memref<8x8xi32, #tpu.memory_space<smem>>
    %134 = arith.index_cast %133 : i32 to index
    %c0_76 = arith.constant 0 : index
    %135 = vector.load %arg2[%134, %c0_76] : memref<50x32xf32, #tpu.memory_space<vmem>>, vector<1x32xf32>
    %136 = arith.addf %131, %135 : vector<1x32xf32>
    %c2_i32_77 = arith.constant 2 : i32
    %c3_78 = arith.constant 3 : index
    %137 = arith.index_cast %c2_i32_77 : i32 to index
    %138 = memref.load %arg1[%c3_78, %137] : memref<8x8xi32, #tpu.memory_space<smem>>
    %139 = arith.index_cast %138 : i32 to index
    %c0_79 = arith.constant 0 : index
    %140 = vector.load %arg2[%139, %c0_79] : memref<50x32xf32, #tpu.memory_space<vmem>>, vector<1x32xf32>
    %141 = arith.addf %136, %140 : vector<1x32xf32>
    %c3_i32_80 = arith.constant 3 : i32
    %c3_81 = arith.constant 3 : index
    %142 = arith.index_cast %c3_i32_80 : i32 to index
    %143 = memref.load %arg1[%c3_81, %142] : memref<8x8xi32, #tpu.memory_space<smem>>
    %144 = arith.index_cast %143 : i32 to index
    %c0_82 = arith.constant 0 : index
    %145 = vector.load %arg2[%144, %c0_82] : memref<50x32xf32, #tpu.memory_space<vmem>>, vector<1x32xf32>
    %146 = arith.addf %141, %145 : vector<1x32xf32>
    %c4_i32_83 = arith.constant 4 : i32
    %c3_84 = arith.constant 3 : index
    %147 = arith.index_cast %c4_i32_83 : i32 to index
    %148 = memref.load %arg1[%c3_84, %147] : memref<8x8xi32, #tpu.memory_space<smem>>
    %149 = arith.index_cast %148 : i32 to index
    %c0_85 = arith.constant 0 : index
    %150 = vector.load %arg2[%149, %c0_85] : memref<50x32xf32, #tpu.memory_space<vmem>>, vector<1x32xf32>
    %151 = arith.addf %146, %150 : vector<1x32xf32>
    %c5_i32_86 = arith.constant 5 : i32
    %c3_87 = arith.constant 3 : index
    %152 = arith.index_cast %c5_i32_86 : i32 to index
    %153 = memref.load %arg1[%c3_87, %152] : memref<8x8xi32, #tpu.memory_space<smem>>
    %154 = arith.index_cast %153 : i32 to index
    %c0_88 = arith.constant 0 : index
    %155 = vector.load %arg2[%154, %c0_88] : memref<50x32xf32, #tpu.memory_space<vmem>>, vector<1x32xf32>
    %156 = arith.addf %151, %155 : vector<1x32xf32>
    %c6_i32_89 = arith.constant 6 : i32
    %c3_90 = arith.constant 3 : index
    %157 = arith.index_cast %c6_i32_89 : i32 to index
    %158 = memref.load %arg1[%c3_90, %157] : memref<8x8xi32, #tpu.memory_space<smem>>
    %159 = arith.index_cast %158 : i32 to index
    %c0_91 = arith.constant 0 : index
    %160 = vector.load %arg2[%159, %c0_91] : memref<50x32xf32, #tpu.memory_space<vmem>>, vector<1x32xf32>
    %161 = arith.addf %156, %160 : vector<1x32xf32>
    %c7_i32_92 = arith.constant 7 : i32
    %c3_93 = arith.constant 3 : index
    %162 = arith.index_cast %c7_i32_92 : i32 to index
    %163 = memref.load %arg1[%c3_93, %162] : memref<8x8xi32, #tpu.memory_space<smem>>
    %164 = arith.index_cast %163 : i32 to index
    %c0_94 = arith.constant 0 : index
    %165 = vector.load %arg2[%164, %c0_94] : memref<50x32xf32, #tpu.memory_space<vmem>>, vector<1x32xf32>
    %166 = arith.addf %161, %165 : vector<1x32xf32>
    %c8_i32_95 = arith.constant 8 : i32
    %c3_96 = arith.constant 3 : index
    %c0_97 = arith.constant 0 : index
    %167 = vector.load %arg6[%c3_96, %c0_97] : memref<8x32xf32, #tpu.memory_space<vmem>>, vector<1x32xf32>
    tpu.vector_store %arg6[%c3_96, %c0_97], %166 {strides = array<i32>} : memref<8x32xf32, #tpu.memory_space<vmem>>, vector<1x32xf32>,
    %cst_98 = arith.constant 0.000000e+00 : f32
    %168 = vector.broadcast %cst_98 : f32 to vector<1x32xf32>
    %c0_i32_99 = arith.constant 0 : i32
    %c4 = arith.constant 4 : index
    %169 = arith.index_cast %c0_i32_99 : i32 to index
    %170 = memref.load %arg1[%c4, %169] : memref<8x8xi32, #tpu.memory_space<smem>>
    %171 = arith.index_cast %170 : i32 to index
    %c0_100 = arith.constant 0 : index
    %172 = vector.load %arg2[%171, %c0_100] : memref<50x32xf32, #tpu.memory_space<vmem>>, vector<1x32xf32>
    %173 = arith.addf %168, %172 : vector<1x32xf32>
    %c1_i32_101 = arith.constant 1 : i32
    %c4_102 = arith.constant 4 : index
    %174 = arith.index_cast %c1_i32_101 : i32 to index
    %175 = memref.load %arg1[%c4_102, %174] : memref<8x8xi32, #tpu.memory_space<smem>>
    %176 = arith.index_cast %175 : i32 to index
    %c0_103 = arith.constant 0 : index
    %177 = vector.load %arg2[%176, %c0_103] : memref<50x32xf32, #tpu.memory_space<vmem>>, vector<1x32xf32>
    %178 = arith.addf %173, %177 : vector<1x32xf32>
    %c2_i32_104 = arith.constant 2 : i32
    %c4_105 = arith.constant 4 : index
    %179 = arith.index_cast %c2_i32_104 : i32 to index
    %180 = memref.load %arg1[%c4_105, %179] : memref<8x8xi32, #tpu.memory_space<smem>>
    %181 = arith.index_cast %180 : i32 to index
    %c0_106 = arith.constant 0 : index
    %182 = vector.load %arg2[%181, %c0_106] : memref<50x32xf32, #tpu.memory_space<vmem>>, vector<1x32xf32>
    %183 = arith.addf %178, %182 : vector<1x32xf32>
    %c3_i32_107 = arith.constant 3 : i32
    %c4_108 = arith.constant 4 : index
    %184 = arith.index_cast %c3_i32_107 : i32 to index
    %185 = memref.load %arg1[%c4_108, %184] : memref<8x8xi32, #tpu.memory_space<smem>>
    %186 = arith.index_cast %185 : i32 to index
    %c0_109 = arith.constant 0 : index
    %187 = vector.load %arg2[%186, %c0_109] : memref<50x32xf32, #tpu.memory_space<vmem>>, vector<1x32xf32>
    %188 = arith.addf %183, %187 : vector<1x32xf32>
    %c4_i32_110 = arith.constant 4 : i32
    %c4_111 = arith.constant 4 : index
    %189 = arith.index_cast %c4_i32_110 : i32 to index
    %190 = memref.load %arg1[%c4_111, %189] : memref<8x8xi32, #tpu.memory_space<smem>>
    %191 = arith.index_cast %190 : i32 to index
    %c0_112 = arith.constant 0 : index
    %192 = vector.load %arg2[%191, %c0_112] : memref<50x32xf32, #tpu.memory_space<vmem>>, vector<1x32xf32>
    %193 = arith.addf %188, %192 : vector<1x32xf32>
    %c5_i32_113 = arith.constant 5 : i32
    %c4_114 = arith.constant 4 : index
    %194 = arith.index_cast %c5_i32_113 : i32 to index
    %195 = memref.load %arg1[%c4_114, %194] : memref<8x8xi32, #tpu.memory_space<smem>>
    %196 = arith.index_cast %195 : i32 to index
    %c0_115 = arith.constant 0 : index
    %197 = vector.load %arg2[%196, %c0_115] : memref<50x32xf32, #tpu.memory_space<vmem>>, vector<1x32xf32>
    %198 = arith.addf %193, %197 : vector<1x32xf32>
    %c6_i32_116 = arith.constant 6 : i32
    %c4_117 = arith.constant 4 : index
    %199 = arith.index_cast %c6_i32_116 : i32 to index
    %200 = memref.load %arg1[%c4_117, %199] : memref<8x8xi32, #tpu.memory_space<smem>>
    %201 = arith.index_cast %200 : i32 to index
    %c0_118 = arith.constant 0 : index
    %202 = vector.load %arg2[%201, %c0_118] : memref<50x32xf32, #tpu.memory_space<vmem>>, vector<1x32xf32>
    %203 = arith.addf %198, %202 : vector<1x32xf32>
    %c7_i32_119 = arith.constant 7 : i32
    %c4_120 = arith.constant 4 : index
    %204 = arith.index_cast %c7_i32_119 : i32 to index
    %205 = memref.load %arg1[%c4_120, %204] : memref<8x8xi32, #tpu.memory_space<smem>>
    %206 = arith.index_cast %205 : i32 to index
    %c0_121 = arith.constant 0 : index
    %207 = vector.load %arg2[%206, %c0_121] : memref<50x32xf32, #tpu.memory_space<vmem>>, vector<1x32xf32>
    %208 = arith.addf %203, %207 : vector<1x32xf32>
    %c8_i32_122 = arith.constant 8 : i32
    %c4_123 = arith.constant 4 : index
    %c0_124 = arith.constant 0 : index
    %209 = vector.load %arg6[%c4_123, %c0_124] : memref<8x32xf32, #tpu.memory_space<vmem>>, vector<1x32xf32>
    tpu.vector_store %arg6[%c4_123, %c0_124], %208 {strides = array<i32>} : memref<8x32xf32, #tpu.memory_space<vmem>>, vector<1x32xf32>,
    %cst_125 = arith.constant 0.000000e+00 : f32
    %210 = vector.broadcast %cst_125 : f32 to vector<1x32xf32>
    %c0_i32_126 = arith.constant 0 : i32
    %c5 = arith.constant 5 : index
    %211 = arith.index_cast %c0_i32_126 : i32 to index
    %212 = memref.load %arg1[%c5, %211] : memref<8x8xi32, #tpu.memory_space<smem>>
    %213 = arith.index_cast %212 : i32 to index
    %c0_127 = arith.constant 0 : index
    %214 = vector.load %arg2[%213, %c0_127] : memref<50x32xf32, #tpu.memory_space<vmem>>, vector<1x32xf32>
    %215 = arith.addf %210, %214 : vector<1x32xf32>
    %c1_i32_128 = arith.constant 1 : i32
    %c5_129 = arith.constant 5 : index
    %216 = arith.index_cast %c1_i32_128 : i32 to index
    %217 = memref.load %arg1[%c5_129, %216] : memref<8x8xi32, #tpu.memory_space<smem>>
    %218 = arith.index_cast %217 : i32 to index
    %c0_130 = arith.constant 0 : index
    %219 = vector.load %arg2[%218, %c0_130] : memref<50x32xf32, #tpu.memory_space<vmem>>, vector<1x32xf32>
    %220 = arith.addf %215, %219 : vector<1x32xf32>
    %c2_i32_131 = arith.constant 2 : i32
    %c5_132 = arith.constant 5 : index
    %221 = arith.index_cast %c2_i32_131 : i32 to index
    %222 = memref.load %arg1[%c5_132, %221] : memref<8x8xi32, #tpu.memory_space<smem>>
    %223 = arith.index_cast %222 : i32 to index
    %c0_133 = arith.constant 0 : index
    %224 = vector.load %arg2[%223, %c0_133] : memref<50x32xf32, #tpu.memory_space<vmem>>, vector<1x32xf32>
    %225 = arith.addf %220, %224 : vector<1x32xf32>
    %c3_i32_134 = arith.constant 3 : i32
    %c5_135 = arith.constant 5 : index
    %226 = arith.index_cast %c3_i32_134 : i32 to index
    %227 = memref.load %arg1[%c5_135, %226] : memref<8x8xi32, #tpu.memory_space<smem>>
    %228 = arith.index_cast %227 : i32 to index
    %c0_136 = arith.constant 0 : index
    %229 = vector.load %arg2[%228, %c0_136] : memref<50x32xf32, #tpu.memory_space<vmem>>, vector<1x32xf32>
    %230 = arith.addf %225, %229 : vector<1x32xf32>
    %c4_i32_137 = arith.constant 4 : i32
    %c5_138 = arith.constant 5 : index
    %231 = arith.index_cast %c4_i32_137 : i32 to index
    %232 = memref.load %arg1[%c5_138, %231] : memref<8x8xi32, #tpu.memory_space<smem>>
    %233 = arith.index_cast %232 : i32 to index
    %c0_139 = arith.constant 0 : index
    %234 = vector.load %arg2[%233, %c0_139] : memref<50x32xf32, #tpu.memory_space<vmem>>, vector<1x32xf32>
    %235 = arith.addf %230, %234 : vector<1x32xf32>
    %c5_i32_140 = arith.constant 5 : i32
    %c5_141 = arith.constant 5 : index
    %236 = arith.index_cast %c5_i32_140 : i32 to index
    %237 = memref.load %arg1[%c5_141, %236] : memref<8x8xi32, #tpu.memory_space<smem>>
    %238 = arith.index_cast %237 : i32 to index
    %c0_142 = arith.constant 0 : index
    %239 = vector.load %arg2[%238, %c0_142] : memref<50x32xf32, #tpu.memory_space<vmem>>, vector<1x32xf32>
    %240 = arith.addf %235, %239 : vector<1x32xf32>
    %c6_i32_143 = arith.constant 6 : i32
    %c5_144 = arith.constant 5 : index
    %241 = arith.index_cast %c6_i32_143 : i32 to index
    %242 = memref.load %arg1[%c5_144, %241] : memref<8x8xi32, #tpu.memory_space<smem>>
    %243 = arith.index_cast %242 : i32 to index
    %c0_145 = arith.constant 0 : index
    %244 = vector.load %arg2[%243, %c0_145] : memref<50x32xf32, #tpu.memory_space<vmem>>, vector<1x32xf32>
    %245 = arith.addf %240, %244 : vector<1x32xf32>
    %c7_i32_146 = arith.constant 7 : i32
    %c5_147 = arith.constant 5 : index
    %246 = arith.index_cast %c7_i32_146 : i32 to index
    %247 = memref.load %arg1[%c5_147, %246] : memref<8x8xi32, #tpu.memory_space<smem>>
    %248 = arith.index_cast %247 : i32 to index
    %c0_148 = arith.constant 0 : index
    %249 = vector.load %arg2[%248, %c0_148] : memref<50x32xf32, #tpu.memory_space<vmem>>, vector<1x32xf32>
    %250 = arith.addf %245, %249 : vector<1x32xf32>
    %c8_i32_149 = arith.constant 8 : i32
    %c5_150 = arith.constant 5 : index
    %c0_151 = arith.constant 0 : index
    %251 = vector.load %arg6[%c5_150, %c0_151] : memref<8x32xf32, #tpu.memory_space<vmem>>, vector<1x32xf32>
    tpu.vector_store %arg6[%c5_150, %c0_151], %250 {strides = array<i32>} : memref<8x32xf32, #tpu.memory_space<vmem>>, vector<1x32xf32>,
    %cst_152 = arith.constant 0.000000e+00 : f32
    %252 = vector.broadcast %cst_152 : f32 to vector<1x32xf32>
    %c0_i32_153 = arith.constant 0 : i32
    %c6 = arith.constant 6 : index
    %253 = arith.index_cast %c0_i32_153 : i32 to index
    %254 = memref.load %arg1[%c6, %253] : memref<8x8xi32, #tpu.memory_space<smem>>
    %255 = arith.index_cast %254 : i32 to index
    %c0_154 = arith.constant 0 : index
    %256 = vector.load %arg2[%255, %c0_154] : memref<50x32xf32, #tpu.memory_space<vmem>>, vector<1x32xf32>
    %257 = arith.addf %252, %256 : vector<1x32xf32>
    %c1_i32_155 = arith.constant 1 : i32
    %c6_156 = arith.constant 6 : index
    %258 = arith.index_cast %c1_i32_155 : i32 to index
    %259 = memref.load %arg1[%c6_156, %258] : memref<8x8xi32, #tpu.memory_space<smem>>
    %260 = arith.index_cast %259 : i32 to index
    %c0_157 = arith.constant 0 : index
    %261 = vector.load %arg2[%260, %c0_157] : memref<50x32xf32, #tpu.memory_space<vmem>>, vector<1x32xf32>
    %262 = arith.addf %257, %261 : vector<1x32xf32>
    %c2_i32_158 = arith.constant 2 : i32
    %c6_159 = arith.constant 6 : index
    %263 = arith.index_cast %c2_i32_158 : i32 to index
    %264 = memref.load %arg1[%c6_159, %263] : memref<8x8xi32, #tpu.memory_space<smem>>
    %265 = arith.index_cast %264 : i32 to index
    %c0_160 = arith.constant 0 : index
    %266 = vector.load %arg2[%265, %c0_160] : memref<50x32xf32, #tpu.memory_space<vmem>>, vector<1x32xf32>
    %267 = arith.addf %262, %266 : vector<1x32xf32>
    %c3_i32_161 = arith.constant 3 : i32
    %c6_162 = arith.constant 6 : index
    %268 = arith.index_cast %c3_i32_161 : i32 to index
    %269 = memref.load %arg1[%c6_162, %268] : memref<8x8xi32, #tpu.memory_space<smem>>
    %270 = arith.index_cast %269 : i32 to index
    %c0_163 = arith.constant 0 : index
    %271 = vector.load %arg2[%270, %c0_163] : memref<50x32xf32, #tpu.memory_space<vmem>>, vector<1x32xf32>
    %272 = arith.addf %267, %271 : vector<1x32xf32>
    %c4_i32_164 = arith.constant 4 : i32
    %c6_165 = arith.constant 6 : index
    %273 = arith.index_cast %c4_i32_164 : i32 to index
    %274 = memref.load %arg1[%c6_165, %273] : memref<8x8xi32, #tpu.memory_space<smem>>
    %275 = arith.index_cast %274 : i32 to index
    %c0_166 = arith.constant 0 : index
    %276 = vector.load %arg2[%275, %c0_166] : memref<50x32xf32, #tpu.memory_space<vmem>>, vector<1x32xf32>
    %277 = arith.addf %272, %276 : vector<1x32xf32>
    %c5_i32_167 = arith.constant 5 : i32
    %c6_168 = arith.constant 6 : index
    %278 = arith.index_cast %c5_i32_167 : i32 to index
    %279 = memref.load %arg1[%c6_168, %278] : memref<8x8xi32, #tpu.memory_space<smem>>
    %280 = arith.index_cast %279 : i32 to index
    %c0_169 = arith.constant 0 : index
    %281 = vector.load %arg2[%280, %c0_169] : memref<50x32xf32, #tpu.memory_space<vmem>>, vector<1x32xf32>
    %282 = arith.addf %277, %281 : vector<1x32xf32>
    %c6_i32_170 = arith.constant 6 : i32
    %c6_171 = arith.constant 6 : index
    %283 = arith.index_cast %c6_i32_170 : i32 to index
    %284 = memref.load %arg1[%c6_171, %283] : memref<8x8xi32, #tpu.memory_space<smem>>
    %285 = arith.index_cast %284 : i32 to index
    %c0_172 = arith.constant 0 : index
    %286 = vector.load %arg2[%285, %c0_172] : memref<50x32xf32, #tpu.memory_space<vmem>>, vector<1x32xf32>
    %287 = arith.addf %282, %286 : vector<1x32xf32>
    %c7_i32_173 = arith.constant 7 : i32
    %c6_174 = arith.constant 6 : index
    %288 = arith.index_cast %c7_i32_173 : i32 to index
    %289 = memref.load %arg1[%c6_174, %288] : memref<8x8xi32, #tpu.memory_space<smem>>
    %290 = arith.index_cast %289 : i32 to index
    %c0_175 = arith.constant 0 : index
    %291 = vector.load %arg2[%290, %c0_175] : memref<50x32xf32, #tpu.memory_space<vmem>>, vector<1x32xf32>
    %292 = arith.addf %287, %291 : vector<1x32xf32>
    %c8_i32_176 = arith.constant 8 : i32
    %c6_177 = arith.constant 6 : index
    %c0_178 = arith.constant 0 : index
    %293 = vector.load %arg6[%c6_177, %c0_178] : memref<8x32xf32, #tpu.memory_space<vmem>>, vector<1x32xf32>
    tpu.vector_store %arg6[%c6_177, %c0_178], %292 {strides = array<i32>} : memref<8x32xf32, #tpu.memory_space<vmem>>, vector<1x32xf32>,
    %cst_179 = arith.constant 0.000000e+00 : f32
    %294 = vector.broadcast %cst_179 : f32 to vector<1x32xf32>
    %c0_i32_180 = arith.constant 0 : i32
    %c7 = arith.constant 7 : index
    %295 = arith.index_cast %c0_i32_180 : i32 to index
    %296 = memref.load %arg1[%c7, %295] : memref<8x8xi32, #tpu.memory_space<smem>>
    %297 = arith.index_cast %296 : i32 to index
    %c0_181 = arith.constant 0 : index
    %298 = vector.load %arg2[%297, %c0_181] : memref<50x32xf32, #tpu.memory_space<vmem>>, vector<1x32xf32>
    %299 = arith.addf %294, %298 : vector<1x32xf32>
    %c1_i32_182 = arith.constant 1 : i32
    %c7_183 = arith.constant 7 : index
    %300 = arith.index_cast %c1_i32_182 : i32 to index
    %301 = memref.load %arg1[%c7_183, %300] : memref<8x8xi32, #tpu.memory_space<smem>>
    %302 = arith.index_cast %301 : i32 to index
    %c0_184 = arith.constant 0 : index
    %303 = vector.load %arg2[%302, %c0_184] : memref<50x32xf32, #tpu.memory_space<vmem>>, vector<1x32xf32>
    %304 = arith.addf %299, %303 : vector<1x32xf32>
    %c2_i32_185 = arith.constant 2 : i32
    %c7_186 = arith.constant 7 : index
    %305 = arith.index_cast %c2_i32_185 : i32 to index
    %306 = memref.load %arg1[%c7_186, %305] : memref<8x8xi32, #tpu.memory_space<smem>>
    %307 = arith.index_cast %306 : i32 to index
    %c0_187 = arith.constant 0 : index
    %308 = vector.load %arg2[%307, %c0_187] : memref<50x32xf32, #tpu.memory_space<vmem>>, vector<1x32xf32>
    %309 = arith.addf %304, %308 : vector<1x32xf32>
    %c3_i32_188 = arith.constant 3 : i32
    %c7_189 = arith.constant 7 : index
    %310 = arith.index_cast %c3_i32_188 : i32 to index
    %311 = memref.load %arg1[%c7_189, %310] : memref<8x8xi32, #tpu.memory_space<smem>>
    %312 = arith.index_cast %311 : i32 to index
    %c0_190 = arith.constant 0 : index
    %313 = vector.load %arg2[%312, %c0_190] : memref<50x32xf32, #tpu.memory_space<vmem>>, vector<1x32xf32>
    %314 = arith.addf %309, %313 : vector<1x32xf32>
    %c4_i32_191 = arith.constant 4 : i32
    %c7_192 = arith.constant 7 : index
    %315 = arith.index_cast %c4_i32_191 : i32 to index
    %316 = memref.load %arg1[%c7_192, %315] : memref<8x8xi32, #tpu.memory_space<smem>>
    %317 = arith.index_cast %316 : i32 to index
    %c0_193 = arith.constant 0 : index
    %318 = vector.load %arg2[%317, %c0_193] : memref<50x32xf32, #tpu.memory_space<vmem>>, vector<1x32xf32>
    %319 = arith.addf %314, %318 : vector<1x32xf32>
    %c5_i32_194 = arith.constant 5 : i32
    %c7_195 = arith.constant 7 : index
    %320 = arith.index_cast %c5_i32_194 : i32 to index
    %321 = memref.load %arg1[%c7_195, %320] : memref<8x8xi32, #tpu.memory_space<smem>>
    %322 = arith.index_cast %321 : i32 to index
    %c0_196 = arith.constant 0 : index
    %323 = vector.load %arg2[%322, %c0_196] : memref<50x32xf32, #tpu.memory_space<vmem>>, vector<1x32xf32>
    %324 = arith.addf %319, %323 : vector<1x32xf32>
    %c6_i32_197 = arith.constant 6 : i32
    %c7_198 = arith.constant 7 : index
    %325 = arith.index_cast %c6_i32_197 : i32 to index
    %326 = memref.load %arg1[%c7_198, %325] : memref<8x8xi32, #tpu.memory_space<smem>>
    %327 = arith.index_cast %326 : i32 to index
    %c0_199 = arith.constant 0 : index
    %328 = vector.load %arg2[%327, %c0_199] : memref<50x32xf32, #tpu.memory_space<vmem>>, vector<1x32xf32>
    %329 = arith.addf %324, %328 : vector<1x32xf32>
    %c7_i32_200 = arith.constant 7 : i32
    %c7_201 = arith.constant 7 : index
    %330 = arith.index_cast %c7_i32_200 : i32 to index
    %331 = memref.load %arg1[%c7_201, %330] : memref<8x8xi32, #tpu.memory_space<smem>>
    %332 = arith.index_cast %331 : i32 to index
    %c0_202 = arith.constant 0 : index
    %333 = vector.load %arg2[%332, %c0_202] : memref<50x32xf32, #tpu.memory_space<vmem>>, vector<1x32xf32>
    %334 = arith.addf %329, %333 : vector<1x32xf32>
    %c8_i32_203 = arith.constant 8 : i32
    %c7_204 = arith.constant 7 : index
    %c0_205 = arith.constant 0 : index
    %335 = vector.load %arg6[%c7_204, %c0_205] : memref<8x32xf32, #tpu.memory_space<vmem>>, vector<1x32xf32>
    tpu.vector_store %arg6[%c7_204, %c0_205], %334 {strides = array<i32>} : memref<8x32xf32, #tpu.memory_space<vmem>>, vector<1x32xf32>,
    %c0_206 = arith.constant 0 : index
    %c0_207 = arith.constant 0 : index
    %336 = vector.load %arg6[%c0_206, %c0_207] : memref<8x32xf32, #tpu.memory_space<vmem>>, vector<8x32xf32>
    %cst_208 = arith.constant 0.000000e+00 : f32
    %337 = vector.broadcast %cst_208 : f32 to vector<8x32xf32>
    %338 = arith.subf %337, %336 : vector<8x32xf32>
    %339 = math.exp %338 : vector<8x32xf32>
    %cst_209 = arith.constant 1.000000e+00 : f32
    %340 = vector.broadcast %cst_209 : f32 to vector<8x32xf32>
    %341 = arith.addf %340, %339 : vector<8x32xf32>
    %342 = tpu.reciprocal %341 : vector<8x32xf32> -> vector<8x32xf32>
    %c0_210 = arith.constant 0 : index
    %c0_211 = arith.constant 0 : index
    %343 = vector.load %arg3[%c0_210, %c0_211] : memref<32x128xf32, #tpu.memory_space<vmem>>, vector<32x128xf32>
    %cst_212 = arith.constant dense<0.000000e+00> : vector<8x128xf32>
    %344 = tpu.matmul %342, %343, %cst_212 {dimension_numbers = #tpu.dot_dimension_numbers<[1], [0], [0], [1], [0, 0, 1, 1], [], []>} : vector<8x32xf32>, vector<32x128xf32>, vector<8x128xf32> -> vector<8x128xf32>
    %c0_213 = arith.constant 0 : index
    %c0_214 = arith.constant 0 : index
    %345 = vector.load %arg4[%c0_213, %c0_214] : memref<1x128xf32, #tpu.memory_space<vmem>>, vector<1x128xf32>
    %346 = vector.broadcast %345 : vector<1x128xf32> to vector<8x128xf32>
    %347 = arith.addf %344, %346 : vector<8x128xf32>
    %c0_215 = arith.constant 0 : index
    %c0_216 = arith.constant 0 : index
    %348 = vector.load %arg5[%c0_215, %c0_216] : memref<8x128xf32, #tpu.memory_space<vmem>>, vector<8x128xf32>
    tpu.vector_store %arg5[%c0_215, %c0_216], %347 {strides = array<i32>} : memref<8x128xf32, #tpu.memory_space<vmem>>, vector<8x128xf32>,
    return
  }
  func.func @transform_0(%arg0: i32, %arg1: memref<8x8xi32, #tpu.memory_space<smem>>) -> (i32, i32) {
    %c0_i32 = arith.constant 0 : i32
    %c0_i32_0 = arith.constant 0 : i32
    %c0_i32_1 = arith.constant 0 : i32
    return %c0_i32, %c0_i32_0 : i32, i32
  }
  func.func @transform_1(%arg0: i32, %arg1: memref<8x8xi32, #tpu.memory_space<smem>>) -> (i32, i32) {
    %c0_i32 = arith.constant 0 : i32
    %c0_i32_0 = arith.constant 0 : i32
    %c0_i32_1 = arith.constant 0 : i32
    return %c0_i32, %c0_i32_0 : i32, i32
  }
  func.func @transform_2(%arg0: i32, %arg1: memref<8x8xi32, #tpu.memory_space<smem>>) -> (i32, i32) {
    %c0_i32 = arith.constant 0 : i32
    %c0_i32_0 = arith.constant 0 : i32
    %c0_i32_1 = arith.constant 0 : i32
    return %c0_i32, %c0_i32_0 : i32, i32
  }
  func.func @transform_3(%arg0: i32, %arg1: memref<8x8xi32, #tpu.memory_space<smem>>) -> (i32, i32) {
    %c0_i32 = arith.constant 0 : i32
    %c0_i32_0 = arith.constant 0 : i32
    %c0_i32_1 = arith.constant 0 : i32
    return %c0_i32, %c0_i32_0 : i32, i32
  }
}

</mosaic_0001>

<bundles_post_ra>
// kernel: tpu_custom_call.1
= control target key start
LH: loop header
LB: loop body
LE: loop exit
PB: predicated region body
PF: predicated region fallthrough
CT: control target
= control target key end

     0   :  { %s532_s18 = smov [#allocation4]   ;;  %s858_s0 = inlined_call_operand.vmem [shape: s32[8,8], index: 0, kind: input, shape index: {}]   ;;  %s859_s1 = inlined_call_operand.vmem [shape: f32[50,32], index: 1, kind: input, shape index: {}]   ;;  %s860_s2 = inlined_call_operand.vmem [shape: f32[32,128], index: 2, kind: input, shape index: {}]   ;;  %s861_s3 = inlined_call_operand.vmem [shape: f32[1,128], index: 3, kind: input, shape index: {}]   ;;  %s862_s4 = inlined_call_operand.hbm [shape: f32[8,128], index: 4, kind: output, shape index: {}]  }
   0x1   :  { %s10_s17 = sshll.u32 %s858_s0, 4  ;;  %s11_s17 = int_to_ptr.vmem [resolvable:$true] %s10_s17 }
   0x2   :  { %13 = dma.vmem_to_smem %s11_s17, 128, %s532_s18, [#allocation3] }
   0x3   :  { %528 = dma.done.wait [#allocation3], 128 }
   0x4   :  { %529 = vsyncadd [#allocation3], 4294967168 }
   0x5   :  { %16 = sfence }
   0x6   :  { %v311_v0 = vld [vmem:[%s860_s2 + $0x18] sm:$0xff]  ;;  %v310_v1 = vld [vmem:[%s860_s2 + $0x10] sm:$0xff]  ;;  %s24_s23 = sld [smem:[#allocation4]]  ;;  %v309_v2 = vld [vmem:[%s860_s2 + $0x8] sm:$0xff] }
   0x7   :  { %332 = vmatpush.msra.mxu0 %v311_v0  ;;  %s421_s24 = sld [smem:[#allocation4 + $0x1]] }
   0x8   :  { %s422_s0 = sld [smem:[#allocation4 + $0x2]] }
   0x9   :  { %17 = vsyncpa [#allocation6], 0  ;;  %333 = vmatpush.msra.mxu0 %v310_v1  ;;  %s423_s27 = sld [smem:[#allocation4 + $0x3]]  ;;  %v308_v3 = vld [vmem:[%s860_s2] sm:$0xff]  ;;  %vm56_vm0 = vcmask 253952   ;;  %vm316_vm5 = vcmask 261120  }
   0xa   :  { %s424_s30 = sld [smem:[#allocation4 + $0x4]] }
   0xb   :  { %334 = vmatpush.msra.mxu0 %v309_v2  ;;  %s425_s5 = sld [smem:[#allocation4 + $0x5]] }
   0xc   :  { %s25_s8 = scalar_lea.vmem %s859_s1, %s24_s23  ;;  %s577_s9 = sld [smem:[#allocation4 + $0x6]] }
   0xd   :  { %335 = vmatpush.msra.mxu0 %v308_v3  ;;  %v26_v4 = vld [vmem:[%s25_s8] sm:$0x1]  ;;  %s29_s12 = scalar_lea.vmem %s859_s1, %s421_s24  ;;  %s582_s13 = sld [smem:[#allocation4 + $0x7]] }
   0xe   :  { %v30_v5 = vld [vmem:[%s29_s12] sm:$0x1]  ;;  %s33_s15 = scalar_lea.vmem %s859_s1, %s422_s0  ;;  %s428_s16 = sld [smem:[#allocation4 + $0x80]] }
   0xf   :  { %v31_v6 = vadd.f32 %v30_v5, %v26_v4  ;;  %v34_v7 = vld [vmem:[%s33_s15] sm:$0x1]  ;;  %s37_s19 = scalar_lea.vmem %s859_s1, %s423_s27  ;;  %s429_s20 = sld [smem:[#allocation4 + $0x81]] }
  0x10   :  { %v38_v8 = vld [vmem:[%s37_s19] sm:$0x1]  ;;  %s41_s23 = scalar_lea.vmem %s859_s1, %s424_s30  ;;  %s430_s24 = sld [smem:[#allocation4 + $0x82]] }
  0x11   :  { %v35_v9 = vadd.f32 %v34_v7, %v31_v6  ;;  %s45_s0 = scalar_lea.vmem %s859_s1, %s425_s5  ;;  %s431_s28 = sld [smem:[#allocation4 + $0x83]]  ;;  %v42_v10 = vld [vmem:[%s41_s23] sm:$0x1] }
  0x12   :  { %s49_s7 = scalar_lea.vmem %s859_s1, %s577_s9  ;;  %s600_s8 = sld [smem:[#allocation4 + $0x84]]  ;;  %v46_v12 = vld [vmem:[%s45_s0] sm:$0x1] }
  0x13   :  { %v39_v11 = vadd.f32 %v38_v8, %v35_v9  ;;  %s53_s11 = scalar_lea.vmem %s859_s1, %s582_s13  ;;  %s606_s30 = sld [smem:[#allocation4 + $0x85]]  ;;  %v50_v15 = vld [vmem:[%s49_s7] sm:$0x1] }
  0x14   :  { %s59_s5 = scalar_lea.vmem %s859_s1, %s428_s16  ;;  %s611_s14 = sld [smem:[#allocation4 + $0x86]]  ;;  %v54_v20 = vld [vmem:[%s53_s11] sm:$0x1] }
  0x15   :  { %v43_v13 = vadd.f32 %v42_v10, %v39_v11  ;;  %v60_v14 = vld [vmem:[%s59_s5] sm:$0x1]  ;;  %s63_s17 = scalar_lea.vmem %s859_s1, %s429_s20  ;;  %s616_s18 = sld [smem:[#allocation4 + $0x87]] }
  0x16   :  { %v64_v16 = vld [vmem:[%s63_s17] sm:$0x1]  ;;  %s67_s21 = scalar_lea.vmem %s859_s1, %s430_s24  ;;  %s436_s22 = sld [smem:[#allocation4 + $0x100]] }
  0x17   :  { %v47_v17 = vadd.f32 %v46_v12, %v43_v13  ;;  %v65_v18 = vadd.f32 %v64_v16, %v60_v14  ;;  %v68_v19 = vld [vmem:[%s67_s21] sm:$0x1]  ;;  %s71_s25 = scalar_lea.vmem %s859_s1, %s431_s28  ;;  %s437_s20 = sld [smem:[#allocation4 + $0x101]] }
  0x18   :  { %v72_v21 = vld [vmem:[%s71_s25] sm:$0x1]  ;;  %s75_s29 = scalar_lea.vmem %s859_s1, %s600_s8  ;;  %s438_s6 = sld [smem:[#allocation4 + $0x102]] }
  0x19   :  { %v51_v22 = vadd.f32 %v50_v15, %v47_v17  ;;  %v69_v23 = vadd.f32 %v68_v19, %v65_v18  ;;  %s79_s27 = scalar_lea.vmem %s859_s1, %s606_s30  ;;  %s439_s10 = sld [smem:[#allocation4 + $0x103]]  ;;  %v76_v24 = vld [vmem:[%s75_s29] sm:$0x1] }
  0x1a   :  { %s83_s2 = scalar_lea.vmem %s859_s1, %s611_s14  ;;  %s636_s11 = sld [smem:[#allocation4 + $0x104]]  ;;  %v80_v27 = vld [vmem:[%s79_s27] sm:$0x1] }
  0x1b   :  { %v55_v25 = vadd.f32 %v54_v20, %v51_v22  ;;  %v73_v26 = vadd.f32 %v72_v21, %v69_v23  ;;  %s87_s9 = scalar_lea.vmem %s859_s1, %s616_s18  ;;  %s642_s15 = sld [smem:[#allocation4 + $0x105]]  ;;  %v84_v30 = vld [vmem:[%s83_s2] sm:$0x1] }
  0x1c   :  { %s92_s13 = scalar_lea.vmem %s859_s1, %s436_s22  ;;  %s647_s19 = sld [smem:[#allocation4 + $0x106]]  ;;  %v88_v35 = vld [vmem:[%s87_s9] sm:$0x1] }
  0x1d   :  { %57 = vst.msk [vmem:[#allocation2] sm:$0x1] %vm56_vm0, %v55_v25  ;;  %v77_v28 = vadd.f32 %v76_v24, %v73_v26  ;;  %v93_v29 = vld [vmem:[%s92_s13] sm:$0x1]  ;;  %s96_s16 = scalar_lea.vmem %s859_s1, %s437_s20  ;;  %s653_s23 = sld [smem:[#allocation4 + $0x107]] }
  0x1e   :  { %v97_v31 = vld [vmem:[%s96_s16] sm:$0x1]  ;;  %s100_s22 = scalar_lea.vmem %s859_s1, %s438_s6  ;;  %s444_s26 = sld [smem:[#allocation4 + $0x180]] }
  0x1f   :  { %v81_v32 = vadd.f32 %v80_v27, %v77_v28  ;;  %v98_v33 = vadd.f32 %v97_v31, %v93_v29  ;;  %v101_v34 = vld [vmem:[%s100_s22] sm:$0x1]  ;;  %s104_s24 = scalar_lea.vmem %s859_s1, %s439_s10  ;;  %s445_s20 = sld [smem:[#allocation4 + $0x181]] }
  0x20   :  { %v105_v36 = vld [vmem:[%s104_s24] sm:$0x1]  ;;  %s108_s12 = scalar_lea.vmem %s859_s1, %s636_s11  ;;  %s446_s28 = sld [smem:[#allocation4 + $0x182]] }
  0x21   :  { %v85_v37 = vadd.f32 %v84_v30, %v81_v32  ;;  %v102_v38 = vadd.f32 %v101_v34, %v98_v33  ;;  %s112_s5 = scalar_lea.vmem %s859_s1, %s642_s15  ;;  %s447_s8 = sld [smem:[#allocation4 + $0x183]]  ;;  %v109_v39 = vld [vmem:[%s108_s12] sm:$0x1] }
  0x22   :  { %s116_s10 = scalar_lea.vmem %s859_s1, %s647_s19  ;;  %s673_s13 = sld [smem:[#allocation4 + $0x184]]  ;;  %v113_v42 = vld [vmem:[%s112_s5] sm:$0x1] }
  0x23   :  { %v89_v40 = vadd.f32 %v88_v35, %v85_v37  ;;  %v106_v41 = vadd.f32 %v105_v36, %v102_v38  ;;  %s120_s11 = scalar_lea.vmem %s859_s1, %s653_s23  ;;  %s679_s21 = sld [smem:[#allocation4 + $0x185]]  ;;  %v117_v45 = vld [vmem:[%s116_s10] sm:$0x1] }
  0x24   :  { %s125_s15 = scalar_lea.vmem %s859_s1, %s444_s26  ;;  %s684_s25 = sld [smem:[#allocation4 + $0x186]]  ;;  %v121_v50 = vld [vmem:[%s120_s11] sm:$0x1] }
  0x25   :  { %90 = vst.msk [vmem:[#allocation2 + $0x1] sm:$0x1] %vm56_vm0, %v89_v40  ;;  %v110_v43 = vadd.f32 %v109_v39, %v106_v41  ;;  %v126_v44 = vld [vmem:[%s125_s15] sm:$0x1]  ;;  %s129_s0 = scalar_lea.vmem %s859_s1, %s445_s20  ;;  %s690_s29 = sld [smem:[#allocation4 + $0x187]] }
  0x26   :  { %v130_v46 = vld [vmem:[%s129_s0] sm:$0x1]  ;;  %s133_s26 = scalar_lea.vmem %s859_s1, %s446_s28  ;;  %s452_s7 = sld [smem:[#allocation4 + $0x200]] }
  0x27   :  { %v114_v47 = vadd.f32 %v113_v42, %v110_v43  ;;  %v131_v48 = vadd.f32 %v130_v46, %v126_v44  ;;  %v134_v49 = vld [vmem:[%s133_s26] sm:$0x1]  ;;  %s137_s6 = scalar_lea.vmem %s859_s1, %s447_s8  ;;  %s453_s20 = sld [smem:[#allocation4 + $0x201]] }
  0x28   :  { %v138_v51 = vld [vmem:[%s137_s6] sm:$0x1]  ;;  %s141_s17 = scalar_lea.vmem %s859_s1, %s673_s13  ;;  %s454_s30 = sld [smem:[#allocation4 + $0x202]] }
  0x29   :  { %v118_v52 = vadd.f32 %v117_v45, %v114_v47  ;;  %v135_v53 = vadd.f32 %v134_v49, %v131_v48  ;;  %s145_s9 = scalar_lea.vmem %s859_s1, %s679_s21  ;;  %s455_s14 = sld [smem:[#allocation4 + $0x203]]  ;;  %v142_v54 = vld [vmem:[%s141_s17] sm:$0x1] }
  0x2a   :  { %s149_s8 = scalar_lea.vmem %s859_s1, %s684_s25  ;;  %s710_s15 = sld [smem:[#allocation4 + $0x204]]  ;;  %v146_v57 = vld [vmem:[%s145_s9] sm:$0x1] }
  0x2b   :  { %v122_v55 = vadd.f32 %v121_v50, %v118_v52  ;;  %v139_v56 = vadd.f32 %v138_v51, %v135_v53  ;;  %s153_s13 = scalar_lea.vmem %s859_s1, %s690_s29  ;;  %s716_s22 = sld [smem:[#allocation4 + $0x205]]  ;;  %v150_v60 = vld [vmem:[%s149_s8] sm:$0x1] }
  0x2c   :  { %s158_s21 = scalar_lea.vmem %s859_s1, %s452_s7  ;;  %s721_s24 = sld [smem:[#allocation4 + $0x206]]  ;;  %v154_v1 = vld [vmem:[%s153_s13] sm:$0x1] }
  0x2d   :  { %123 = vst.msk [vmem:[#allocation2 + $0x2] sm:$0x1] %vm56_vm0, %v122_v55  ;;  %v143_v58 = vadd.f32 %v142_v54, %v139_v56  ;;  %v159_v59 = vld [vmem:[%s158_s21] sm:$0x1]  ;;  %s162_s27 = scalar_lea.vmem %s859_s1, %s453_s20  ;;  %s727_s12 = sld [smem:[#allocation4 + $0x207]] }
  0x2e   :  { %v163_v61 = vld [vmem:[%s162_s27] sm:$0x1]  ;;  %s166_s7 = scalar_lea.vmem %s859_s1, %s454_s30  ;;  %s460_s2 = sld [smem:[#allocation4 + $0x280]] }
  0x2f   :  { %v147_v62 = vadd.f32 %v146_v57, %v143_v58  ;;  %v164_v63 = vadd.f32 %v163_v61, %v159_v59  ;;  %v167_v0 = vld [vmem:[%s166_s7] sm:$0x1]  ;;  %s170_s28 = scalar_lea.vmem %s859_s1, %s455_s14  ;;  %s461_s20 = sld [smem:[#allocation4 + $0x281]] }
  0x30   :  { %v171_v2 = vld [vmem:[%s170_s28] sm:$0x1]  ;;  %s174_s16 = scalar_lea.vmem %s859_s1, %s710_s15  ;;  %s462_s18 = sld [smem:[#allocation4 + $0x282]] }
  0x31   :  { %v151_v3 = vadd.f32 %v150_v60, %v147_v62  ;;  %v168_v4 = vadd.f32 %v167_v0, %v164_v63  ;;  %s178_s11 = scalar_lea.vmem %s859_s1, %s716_s22  ;;  %s463_s19 = sld [smem:[#allocation4 + $0x283]]  ;;  %v175_v5 = vld [vmem:[%s174_s16] sm:$0x1] }
  0x32   :  { %s182_s14 = scalar_lea.vmem %s859_s1, %s721_s24  ;;  %s747_s21 = sld [smem:[#allocation4 + $0x284]]  ;;  %v179_v8 = vld [vmem:[%s178_s11] sm:$0x1] }
  0x33   :  { %v155_v6 = vadd.f32 %v154_v1, %v151_v3  ;;  %v172_v7 = vadd.f32 %v171_v2, %v168_v4  ;;  %s186_s15 = scalar_lea.vmem %s859_s1, %s727_s12  ;;  %s753_s26 = sld [smem:[#allocation4 + $0x285]]  ;;  %v183_v11 = vld [vmem:[%s182_s14] sm:$0x1] }
  0x34   :  { %s191_s22 = scalar_lea.vmem %s859_s1, %s460_s2  ;;  %s758_s6 = sld [smem:[#allocation4 + $0x286]]  ;;  %v187_v16 = vld [vmem:[%s186_s15] sm:$0x1] }
  0x35   :  { %156 = vst.msk [vmem:[#allocation2 + $0x3] sm:$0x1] %vm56_vm0, %v155_v6  ;;  %v176_v9 = vadd.f32 %v175_v5, %v172_v7  ;;  %v192_v10 = vld [vmem:[%s191_s22] sm:$0x1]  ;;  %s195_s5 = scalar_lea.vmem %s859_s1, %s461_s20  ;;  %s764_s17 = sld [smem:[#allocation4 + $0x287]] }
  0x36   :  { %v196_v12 = vld [vmem:[%s195_s5] sm:$0x1]  ;;  %s199_s2 = scalar_lea.vmem %s859_s1, %s462_s18  ;;  %s468_s10 = sld [smem:[#allocation4 + $0x300]] }
  0x37   :  { %v180_v13 = vadd.f32 %v179_v8, %v176_v9  ;;  %v197_v14 = vadd.f32 %v196_v12, %v192_v10  ;;  %v200_v15 = vld [vmem:[%s199_s2] sm:$0x1]  ;;  %s203_s30 = scalar_lea.vmem %s859_s1, %s463_s19  ;;  %s469_s20 = sld [smem:[#allocation4 + $0x301]] }
  0x38   :  { %v204_v17 = vld [vmem:[%s203_s30] sm:$0x1]  ;;  %s207_s0 = scalar_lea.vmem %s859_s1, %s747_s21  ;;  %s470_s23 = sld [smem:[#allocation4 + $0x302]] }
  0x39   :  { %v184_v18 = vadd.f32 %v183_v11, %v180_v13  ;;  %v201_v19 = vadd.f32 %v200_v15, %v197_v14  ;;  %s211_s13 = scalar_lea.vmem %s859_s1, %s753_s26  ;;  %s471_s25 = sld [smem:[#allocation4 + $0x303]]  ;;  %v208_v20 = vld [vmem:[%s207_s0] sm:$0x1] }
  0x3a   :  { %s215_s19 = scalar_lea.vmem %s859_s1, %s758_s6  ;;  %s784_s22 = sld [smem:[#allocation4 + $0x304]]  ;;  %v212_v23 = vld [vmem:[%s211_s13] sm:$0x1] }
  0x3b   :  { %v188_v21 = vadd.f32 %v187_v16, %v184_v18  ;;  %v205_v22 = vadd.f32 %v204_v17, %v201_v19  ;;  %s219_s21 = scalar_lea.vmem %s859_s1, %s764_s17  ;;  %s790_s7 = sld [smem:[#allocation4 + $0x305]]  ;;  %v216_v26 = vld [vmem:[%s215_s19] sm:$0x1] }
  0x3c   :  { %s224_s26 = scalar_lea.vmem %s859_s1, %s468_s10  ;;  %s795_s28 = sld [smem:[#allocation4 + $0x306]]  ;;  %v220_v31 = vld [vmem:[%s219_s21] sm:$0x1] }
  0x3d   :  { %189 = vst.msk [vmem:[#allocation2 + $0x4] sm:$0x1] %vm56_vm0, %v188_v21  ;;  %v209_v24 = vadd.f32 %v208_v20, %v205_v22  ;;  %v225_v25 = vld [vmem:[%s224_s26] sm:$0x1]  ;;  %s228_s9 = scalar_lea.vmem %s859_s1, %s469_s20  ;;  %s801_s16 = sld [smem:[#allocation4 + $0x307]] }
  0x3e   :  { %v229_v27 = vld [vmem:[%s228_s9] sm:$0x1]  ;;  %s232_s10 = scalar_lea.vmem %s859_s1, %s470_s23  ;;  %s476_s8 = sld [smem:[#allocation4 + $0x380]] }
  0x3f   :  { %v213_v28 = vadd.f32 %v212_v23, %v209_v24  ;;  %v230_v29 = vadd.f32 %v229_v27, %v225_v25  ;;  %v233_v30 = vld [vmem:[%s232_s10] sm:$0x1]  ;;  %s236_s18 = scalar_lea.vmem %s859_s1, %s471_s25  ;;  %s477_s20 = sld [smem:[#allocation4 + $0x381]] }
  0x40   :  { %v237_v32 = vld [vmem:[%s236_s18] sm:$0x1]  ;;  %s240_s27 = scalar_lea.vmem %s859_s1, %s784_s22  ;;  %s478_s29 = sld [smem:[#allocation4 + $0x382]] }
  0x41   :  { %v217_v33 = vadd.f32 %v216_v26, %v213_v28  ;;  %v234_v34 = vadd.f32 %v233_v30, %v230_v29  ;;  %s244_s15 = scalar_lea.vmem %s859_s1, %s790_s7  ;;  %s479_s24 = sld [smem:[#allocation4 + $0x383]]  ;;  %v241_v35 = vld [vmem:[%s240_s27] sm:$0x1] }
  0x42   :  { %s248_s25 = scalar_lea.vmem %s859_s1, %s795_s28  ;;  %s480_s26 = sld [smem:[#allocation4 + $0x384]]  ;;  %v245_v38 = vld [vmem:[%s244_s15] sm:$0x1] }
  0x43   :  { %v221_v36 = vadd.f32 %v220_v31, %v217_v33  ;;  %v238_v37 = vadd.f32 %v237_v32, %v234_v34  ;;  %s252_s22 = scalar_lea.vmem %s859_s1, %s801_s16  ;;  %s481_s2 = sld [smem:[#allocation4 + $0x385]]  ;;  %v249_v41 = vld [vmem:[%s248_s25] sm:$0x1] }
  0x44   :  { %s257_s30 = scalar_lea.vmem %s859_s1, %s476_s8  ;;  %s482_s7 = sld [smem:[#allocation4 + $0x386]]  ;;  %v253_v46 = vld [vmem:[%s252_s22] sm:$0x1] }
  0x45   :  { %222 = vst.msk [vmem:[#allocation2 + $0x5] sm:$0x1] %vm56_vm0, %v221_v36  ;;  %v242_v39 = vadd.f32 %v241_v35, %v238_v37  ;;  %v258_v40 = vld [vmem:[%s257_s30] sm:$0x1]  ;;  %s261_s11 = scalar_lea.vmem %s859_s1, %s477_s20  ;;  %s483_s0 = sld [smem:[#allocation4 + $0x387]] }
  0x46   :  { %v262_v42 = vld [vmem:[%s261_s11] sm:$0x1]  ;;  %s265_s14 = scalar_lea.vmem %s859_s1, %s478_s29 }
  0x47   :  { %v246_v43 = vadd.f32 %v245_v38, %v242_v39  ;;  %v263_v44 = vadd.f32 %v262_v42, %v258_v40  ;;  %v266_v45 = vld [vmem:[%s265_s14] sm:$0x1]  ;;  %s269_s27 = scalar_lea.vmem %s859_s1, %s479_s24 }
  0x48   :  { %v270_v47 = vld [vmem:[%s269_s27] sm:$0x1]  ;;  %s273_s20 = scalar_lea.vmem %s859_s1, %s480_s26 }
  0x49   :  { %v250_v48 = vadd.f32 %v249_v41, %v246_v43  ;;  %v267_v49 = vadd.f32 %v266_v45, %v263_v44  ;;  %s277_s12 = scalar_lea.vmem %s859_s1, %s481_s2  ;;  %v274_v50 = vld [vmem:[%s273_s20] sm:$0x1]  ;;  %s533_s2 = smov [#allocation5]  }
  0x4a   :  { %s281_s21 = scalar_lea.vmem %s859_s1, %s482_s7  ;;  %v278_v53 = vld [vmem:[%s277_s12] sm:$0x1]  ;;  %s346_s9 = sshll.u32 %s533_s2, 4  ;;  %s347_s9 = int_to_ptr.vmem [resolvable:$true] %s346_s9 }
  0x4b   :  { %v254_v51 = vadd.f32 %v253_v46, %v250_v48  ;;  %v271_v52 = vadd.f32 %v270_v47, %v267_v49  ;;  %s285_s26 = scalar_lea.vmem %s859_s1, %s483_s0  ;;  %v282_v55 = vld [vmem:[%s281_s21] sm:$0x1]  ;;  %s348_s7 = sshll.u32 %s862_s4, 4  ;;  %s349_s7 = int_to_ptr.hbm [resolvable:$true] %s348_s7 }
  0x4c   :  { %v286_v57 = vld [vmem:[%s285_s26] sm:$0x1] }
  0x4d   :  { %255 = vst.msk [vmem:[#allocation2 + $0x6] sm:$0x1] %vm56_vm0, %v254_v51  ;;  %v275_v54 = vadd.f32 %v274_v50, %v271_v52  ;;  %v487_v11 = vld [vmem:[%s861_s3] ss:$0 sm:$0xff] }
  0x4f   :  { %v279_v56 = vadd.f32 %v278_v53, %v275_v54 }
  0x51   :  { %v283_v58 = vadd.f32 %v282_v55, %v279_v56 }
  0x53   :  { %v287_v59 = vadd.f32 %v286_v57, %v283_v58 }
  0x55   :  { %288 = vst.msk [vmem:[#allocation2 + $0x7] sm:$0x1] %vm56_vm0, %v287_v59 }
  0x5c   :  { %v289_v60 = vld [vmem:[#allocation2] sm:$0xff] }
  0x5d   :  { %v290_v61 = vsub.f32 0.0, %v289_v60 }
  0x5f   :  { %v291_v62 = vmul.f32 1.442695, %v290_v61 }
  0x61   :  { %488 = vpow2.f32 %v291_v62 }
  0x67   :  { %v489_v63 = vpop.eup %488 }
  0x68   :  { %v293_v0 = vadd.f32 1.0, %v489_v63 }
  0x6a   :  { %490 = vrcp.f32 %v293_v0  ;;  %v305_v3 = vand.u32 2147483648, %v293_v0  ;;  %vm299_vm1 = vweird.f32 %v293_v0  ;;  %v303_v5 = vand.u32 2147483647, %v293_v0 }
  0x6c   :  { %v306_v7 = vor.u32 1.1754944e-38, %v305_v3  ;;  %vm304_vm4 = vcmp.eq.f32.partialorder %v303_v5, 8.507059e+37 }
  0x70   :  { %v491_v1 = vpop.eup %490 }
  0x71   :  { %v295_v2 = vmul.f32 %v491_v1, %v293_v0  ;;  %vm300_vm2 = vweird.f32 %v491_v1 }
  0x72   :  { %vm301_vm3 = vmor %vm299_vm1, %vm300_vm2 }
  0x73   :  { %v296_v4 = vsub.f32 1.0, %v295_v2 }
  0x75   :  { %v297_v6 = vmul.f32 %v491_v1, %v296_v4 }
  0x77   :  { %v298_v8 = vadd.f32 %v491_v1, %v297_v6 }
  0x79   :  { %v302_v9 = vsel %vm301_vm3, %v491_v1, %v298_v8 }
  0x7a   :  { %v307_v10 = vsel %vm304_vm4, %v306_v7, %v302_v9 }
  0x7b   :  { %484 = vmatmul.msk.f32.vlgmr.msra.gmra.mxu0 %vm316_vm5, %v307_v10 }
  0xf8   :  { %v337_v12 = vpop.f32.mrf.mxu0 }
  0xf9   :  { %v338_v13 = vadd.f32 %v487_v11, %v337_v12 }
  0xfb   :  { %340 = vst [vmem:[#allocation5] sm:$0xff] %v338_v13 }
  0xfc   :  { %351 = dma.vmem_to_hbm [thread:$0]  %s347_s9, 128, %s349_s7, [#allocation6]  }
  0xfd   :  { %530 = dma.done.wait [#allocation6], 128  }
  0xfe   :  { %531 = vsyncadd [#allocation6], 4294967168 }
  0xff   :  { %356 = vsyncpa [#allocation6], 1 }

</bundles_post_ra>
